<compile_context>
chip_gen: v5e
topology: v5e:2x2
jax: 0.10.0
libtpu: 0.0.40
codegen_flags: <defaults>
</compile_context>

<pallas_src>
import functools

import jax
import jax.numpy as jnp
from jax.experimental import pallas as pl
from jax.experimental.pallas import tpu as pltpu

IN_F = 10        # fc1 in_features
HIDDEN = 5       # fc1 out_features
OUT_F = 2        # fc2 out_features
LANES = 128      # lane width of the packed parameter slab

# Packed-parameter row layout (each section starts on an 8-row boundary).
_W1_ROW0 = 0     # rows 0:10 -> w1 (10, 5) zero-padded to 128 lanes
_B1_ROW = 16     # row 16    -> b1 (5,) padded; lane 5 holds a constant 1.0
_W2C0_ROW = 24   # row 24    -> w2[:, 0] in lanes 0:5; lane 5 holds b2[0]
_W2C1_ROW = 32   # row 32    -> w2[:, 1] in lanes 0:5; lane 5 holds b2[1]
_P_ROWS = 40     # total rows (multiple of 8)


def _round_up(n, m):
    return ((n + m - 1) // m) * m


def mlp_kernel(x_ref, p_ref, o_ref):
    # One fused pass per batch tile: fc1 on the MXU, ReLU, fc2 on the VPU/XLU.
    x = x_ref[...]                                      # (tile, 10) f32
    w1 = p_ref[_W1_ROW0:_W1_ROW0 + IN_F, :]             # (10, 128), cols 5.. are zero
    b1 = p_ref[_B1_ROW:_B1_ROW + 1, :]                  # (1, 128); lane 5 == 1.0

    h = jnp.dot(x, w1, preferred_element_type=jnp.float32) + b1
    h = jnp.maximum(h, 0.0)                             # lanes 0:5 real, lane 5 == 1, rest 0

    # fc2: y[:, j] = sum_k h[:, k] * w2[k, j] + b2[j], done as two VPU multiplies
    # plus cross-lane reductions (b2 rides along on the constant-1 lane 5).
    w2c0 = p_ref[_W2C0_ROW:_W2C0_ROW + 1, :]            # (1, 128)
    w2c1 = p_ref[_W2C1_ROW:_W2C1_ROW + 1, :]            # (1, 128)
    y0 = jnp.sum(h * w2c0, axis=-1, keepdims=True)      # (tile, 1) = fc2 col 0 (+ bias)
    y1 = jnp.sum(h * w2c1, axis=-1, keepdims=True)      # (tile, 1) = fc2 col 1 (+ bias)

    col = jax.lax.broadcasted_iota(jnp.int32, (1, OUT_F), 1)   # [[0, 1]]
    y = jnp.where(col == 0, y0, y1)                     # (tile, 2)
    o_ref[...] = y.astype(o_ref.dtype)


def pack_params(w1, b1, w2, b2):
    """Pack fc1/fc2 params into a single lane-dense (40, 128) f32 slab.

    w1: (10, 5)  (transposed nn.Linear fc1 weight)
    b1: (5,)
    w2: (5, 2)   (transposed nn.Linear fc2 weight)
    b2: (2,)
    """
    w1 = w1.astype(jnp.float32)
    b1 = b1.astype(jnp.float32)
    w2 = w2.astype(jnp.float32)
    b2 = b2.astype(jnp.float32)
    p = jnp.zeros((_P_ROWS, LANES), jnp.float32)
    p = p.at[_W1_ROW0:_W1_ROW0 + IN_F, 0:HIDDEN].set(w1)
    p = p.at[_B1_ROW, 0:HIDDEN].set(b1)
    p = p.at[_B1_ROW, HIDDEN].set(1.0)                  # constant-1 hidden lane (folds b2)
    p = p.at[_W2C0_ROW, 0:HIDDEN].set(w2[:, 0])
    p = p.at[_W2C0_ROW, HIDDEN].set(b2[0])
    p = p.at[_W2C1_ROW, 0:HIDDEN].set(w2[:, 1])
    p = p.at[_W2C1_ROW, HIDDEN].set(b2[1])
    return p


@functools.partial(jax.jit, static_argnames=("tile_b",))
def dummy_model_forward(x, packed_params, *, tile_b=2048):
    """x: (B, 10) f32, packed_params: (40, 128) f32 from pack_params()."""
    B = x.shape[0]
    tile_b = max(8, (tile_b // 8) * 8)                  # keep tile a multiple of 8
    if B <= 8:
        tile = B                                        # single block, dims == array dims
    else:
        # Big tiles amortize the ~0.35us per-grid-step cost, but keep >= 2 grid
        # steps so v7x's two TensorCores can both get work.
        tile = max(8, min(tile_b, _round_up(pl.cdiv(B, 2), 8)))
    num_tiles = pl.cdiv(B, tile)                        # Pallas masks the ragged last block

    cost = pl.CostEstimate(
        flops=B * (2 * IN_F * HIDDEN + 2 * HIDDEN * OUT_F),
        transcendentals=0,
        bytes_accessed=B * (IN_F + OUT_F) * 4 + _P_ROWS * LANES * 4,
    )

    return pl.pallas_call(
        mlp_kernel,
        out_shape=jax.ShapeDtypeStruct((B, OUT_F), jnp.float32),
        grid=(num_tiles,),
        in_specs=[
            pl.BlockSpec((tile, IN_F), lambda i: (i, 0)),        # x: tiled over batch
            pl.BlockSpec((_P_ROWS, LANES), lambda i: (0, 0)),    # params: VMEM-resident
        ],
        out_specs=pl.BlockSpec((tile, OUT_F), lambda i: (i, 0)),
        compiler_params=pltpu.CompilerParams(
            dimension_semantics=("parallel",),
            vmem_limit_bytes=32 * 1024 * 1024,
        ),
        cost_estimate=cost,
    )(x, packed_params)


def init_params(key):
    # Mirrors nn.Linear shapes, stored pre-transposed as (in_features, out_features):
    #   fc1: weight (5, 10) -> (10, 5), bias (5,)
    #   fc2: weight (2, 5)  -> (5, 2),  bias (2,)
    k1, k2, k3, k4 = jax.random.split(key, 4)
    w1 = jax.random.normal(k1, (IN_F, HIDDEN), dtype=jnp.float32) * 0.1
    b1 = jax.random.normal(k2, (HIDDEN,), dtype=jnp.float32) * 0.1
    w2 = jax.random.normal(k3, (HIDDEN, OUT_F), dtype=jnp.float32) * 0.1
    b2 = jax.random.normal(k4, (OUT_F,), dtype=jnp.float32) * 0.1
    return w1, b1, w2, b2


if __name__ == "__main__":
    key = jax.random.PRNGKey(0)
    k_x, k_x2, k_p = jax.random.split(key, 3)

    w1, b1, w2, b2 = init_params(k_p)
    packed = pack_params(w1, b1, w2, b2)

    def reference(x):
        return jnp.maximum(x @ w1 + b1, 0.0) @ w2 + b2

    # Primary check: tiny batch (single block whose dims equal the array dims).
    B = 2
    x = jax.random.normal(k_x, (B, IN_F), dtype=jnp.float32)
    out = jax.block_until_ready(dummy_model_forward(x, packed))
    assert out.shape == (B, OUT_F)
    assert jnp.allclose(out, reference(x), atol=1e-5, rtol=1e-5)

    # Multi-tile grid with a ragged final block (tiles of 8 over batch 20).
    B2 = 20
    x2 = jax.random.normal(k_x2, (B2, IN_F), dtype=jnp.float32)
    out2 = jax.block_until_ready(dummy_model_forward(x2, packed, tile_b=8))
    assert out2.shape == (B2, OUT_F)
    assert jnp.allclose(out2, reference(x2), atol=1e-5, rtol=1e-5)

    # Default tile-selection path (tile = 16, two grid steps, ragged last block).
    out3 = jax.block_until_ready(dummy_model_forward(x2, packed))
    assert out3.shape == (B2, OUT_F)
    assert jnp.allclose(out3, reference(x2), atol=1e-5, rtol=1e-5)

    print("KERNEL_OK")
</pallas_src>

<mosaic_0001>
module attributes {stable_mosaic.version = 11 : i64} {
  func.func @mlp_kernel(%arg0: i32, %arg1: memref<2x10xf32, #tpu.memory_space<vmem>>, %arg2: memref<40x128xf32, #tpu.memory_space<vmem>>, %arg3: memref<2x2xf32, #tpu.memory_space<vmem>>) attributes {dimension_semantics = [#tpu.dimension_semantics<parallel>], iteration_bounds = array<i64: 1>, scalar_prefetch = 0 : i64, scratch_operands = 0 : i64, tpu.core_type = #tpu.core_type<tc>, window_params = [{transform_indices = @transform_0, window_bounds = array<i64: 2, 10>}, {pipeline_mode = #tpu.pipeline_mode<synchronous>, transform_indices = @transform_1, window_bounds = array<i64: 40, 128>}, {transform_indices = @transform_2, window_bounds = array<i64: 2, 2>}]} {
    %c0 = arith.constant 0 : index
    %c0_0 = arith.constant 0 : index
    %0 = vector.load %arg1[%c0, %c0_0] : memref<2x10xf32, #tpu.memory_space<vmem>>, vector<2x10xf32>
    %c0_1 = arith.constant 0 : index
    %c0_2 = arith.constant 0 : index
    %1 = vector.load %arg2[%c0_1, %c0_2] : memref<40x128xf32, #tpu.memory_space<vmem>>, vector<10x128xf32>
    %c16 = arith.constant 16 : index
    %c0_3 = arith.constant 0 : index
    %2 = vector.load %arg2[%c16, %c0_3] : memref<40x128xf32, #tpu.memory_space<vmem>>, vector<1x128xf32>
    %cst = arith.constant dense<0.000000e+00> : vector<2x128xf32>
    %3 = tpu.matmul %0, %1, %cst {dimension_numbers = #tpu.dot_dimension_numbers<[1], [0], [0], [1], [0, 0, 1, 1], [], []>} : vector<2x10xf32>, vector<10x128xf32>, vector<2x128xf32> -> vector<2x128xf32>
    %4 = vector.broadcast %2 : vector<1x128xf32> to vector<2x128xf32>
    %5 = arith.addf %3, %4 : vector<2x128xf32>
    %cst_4 = arith.constant 0.000000e+00 : f32
    %6 = vector.broadcast %cst_4 : f32 to vector<2x128xf32>
    %7 = arith.maximumf %5, %6 : vector<2x128xf32>
    %c24 = arith.constant 24 : index
    %c0_5 = arith.constant 0 : index
    %8 = vector.load %arg2[%c24, %c0_5] : memref<40x128xf32, #tpu.memory_space<vmem>>, vector<1x128xf32>
    %c32 = arith.constant 32 : index
    %c0_6 = arith.constant 0 : index
    %9 = vector.load %arg2[%c32, %c0_6] : memref<40x128xf32, #tpu.memory_space<vmem>>, vector<1x128xf32>
    %10 = vector.broadcast %8 : vector<1x128xf32> to vector<2x128xf32>
    %11 = arith.mulf %7, %10 : vector<2x128xf32>
    %cst_7 = arith.constant dense<0.000000e+00> : vector<2xf32>
    %12 = vector.multi_reduction <add>, %11, %cst_7 [1] : vector<2x128xf32> to vector<2xf32>
    %13 = vector.shape_cast %12 : vector<2xf32> to vector<2x1xf32>
    %14 = vector.broadcast %9 : vector<1x128xf32> to vector<2x128xf32>
    %15 = arith.mulf %7, %14 : vector<2x128xf32>
    %cst_8 = arith.constant dense<0.000000e+00> : vector<2xf32>
    %16 = vector.multi_reduction <add>, %15, %cst_8 [1] : vector<2x128xf32> to vector<2xf32>
    %17 = vector.shape_cast %16 : vector<2xf32> to vector<2x1xf32>
    %18 = tpu.iota {dimensions = array<i32: 1>} : vector<1x2xi32>
    %c0_i32 = arith.constant 0 : i32
    %19 = vector.broadcast %c0_i32 : i32 to vector<1x2xi32>
    %20 = arith.cmpi eq, %18, %19 : vector<1x2xi32>
    %21 = vector.shape_cast %20 : vector<1x2xi1> to vector<1x2xi1>
    %22 = vector.broadcast %21 : vector<1x2xi1> to vector<2x2xi1>
    %23 = vector.shape_cast %13 : vector<2x1xf32> to vector<2x1xf32>
    %24 = vector.broadcast %23 : vector<2x1xf32> to vector<2x2xf32>
    %25 = vector.shape_cast %17 : vector<2x1xf32> to vector<2x1xf32>
    %26 = vector.broadcast %25 : vector<2x1xf32> to vector<2x2xf32>
    %27 = arith.select %22, %24, %26 : vector<2x2xi1>, vector<2x2xf32>
    %c0_9 = arith.constant 0 : index
    %c0_10 = arith.constant 0 : index
    %28 = vector.load %arg3[%c0_9, %c0_10] : memref<2x2xf32, #tpu.memory_space<vmem>>, vector<2x2xf32>
    tpu.vector_store %arg3[%c0_9, %c0_10], %27 {strides = array<i32>} : memref<2x2xf32, #tpu.memory_space<vmem>>, vector<2x2xf32>,
    return
  }
  func.func @transform_0(%arg0: i32) -> (i32, i32) {
    %c0_i32 = arith.constant 0 : i32
    %c0_i32_0 = arith.constant 0 : i32
    return %arg0, %c0_i32 : i32, i32
  }
  func.func @transform_1(%arg0: i32) -> (i32, i32) {
    %c0_i32 = arith.constant 0 : i32
    %c0_i32_0 = arith.constant 0 : i32
    %c0_i32_1 = arith.constant 0 : i32
    return %c0_i32, %c0_i32_0 : i32, i32
  }
  func.func @transform_2(%arg0: i32) -> (i32, i32) {
    %c0_i32 = arith.constant 0 : i32
    %c0_i32_0 = arith.constant 0 : i32
    return %arg0, %c0_i32 : i32, i32
  }
}

</mosaic_0001>

<bundles_post_ra>
// kernel: dummy_model_forward.1
= control target key start
LH: loop header
LB: loop body
LE: loop exit
PB: predicated region body
PF: predicated region fallthrough
CT: control target
= control target key end

     0   :  { %7 = vsyncpa [#allocation3], 0  ;;  %s234_s0 = inlined_call_operand.hbm [shape: f32[2,10], index: 0, kind: input, shape index: {}]   ;;  %s235_s1 = inlined_call_operand.hbm [shape: f32[40,128], index: 1, kind: input, shape index: {}]   ;;  %s236_s2 = inlined_call_operand.hbm [shape: f32[2,2], index: 2, kind: output, shape index: {}]  }
   0x1   :  { %8 = vsyncpa [#allocation6], 0 }
   0x2   :  { %9 = vsyncpa [#allocation4], 0  ;;  %s15_s11 = sshll.u32 %s234_s0, 4  ;;  %s202_s12 = smov [#allocation2]   ;;  %s16_s11 = int_to_ptr.hbm [resolvable:$true] %s15_s11 }
   0x3   :  { %s17_s13 = sshll.u32 %s202_s12, 4  ;;  %s25_s16 = sshll.u32 %s235_s1, 4  ;;  %s18_s13 = int_to_ptr.vmem [resolvable:$true] %s17_s13  ;;  %s26_s16 = int_to_ptr.hbm [resolvable:$true] %s25_s16 }
   0x4   :  { %20 = dma.hbm_to_vmem [thread:$0]  %s16_s11, 32, %s18_s13, [#allocation3]  }
   0x5   :  { %s203_s17 = smov [#allocation5]   ;;  %s204_s19 = smov 128  }
   0x6   :  { %s27_s18 = sshll.u32 %s203_s17, 4  ;;  %s205_s20 = smov 8   ;;  %s28_s18 = int_to_ptr.vmem [resolvable:$true] %s27_s18 }
   0x7   :  { %33 = dma.hbm_to_vmem [thread:$0]  %s26_s16, 640, %s28_s18, [#allocation6], %s204_s19, %s204_s19, %s205_s20  }
   0x8   :  { %196 = dma.done.wait [#allocation3], 32  }
   0x9   :  { %197 = vsyncadd [#allocation3], 4294967264 }
   0xa   :  { %198 = dma.done.wait [#allocation6], 640  }
   0xb   :  { %199 = vsyncadd [#allocation6], 4294966656  ;;  %vm51_vm0 = vcmask 1041408   ;;  %v44_v0 = vld [vmem:[#allocation5 + $0x8] sm:$0x3]  ;;  %v43_v1 = vld [vmem:[#allocation5] sm:$0xff]  ;;  %v88_v13 = vlaneseq }
   0xc   :  { %vm47_vm1 = vcmask 80896   ;;  %114 = vmatpush.msk.msra.mxu0 %vm51_vm0, %v44_v0  ;;  %v42_v2 = vld [vmem:[#allocation2] sm:$0x3]  ;;  %v121_v3 = vld [vmem:[#allocation5 + $0x10] ss:$0 sm:$0xff]  ;;  %s206_s0 = smov [#allocation7]  }
   0xd   :  { %v122_v6 = vld [vmem:[#allocation5 + $0x18] ss:$0 sm:$0xff]  ;;  %v123_v10 = vld [vmem:[#allocation5 + $0x20] ss:$0 sm:$0xff]  ;;  %v89_v15 = vand.u32 127, %v88_v13  ;;  %s101_s1 = sshll.u32 %s206_s0, 4  ;;  %s102_s1 = int_to_ptr.vmem [resolvable:$true] %s101_s1 }
   0xe   :  { %70 = vmatpush.msra.mxu0 %v43_v1  ;;  %s103_s23 = sshll.u32 %s236_s2, 4  ;;  %vm94_vm3 = vcmask 9216   ;;  %s104_s23 = int_to_ptr.hbm [resolvable:$true] %s103_s23 }
   0xf   :  { %115 = vmatmul.msk.f32.vlgmr.msra.gmra.mxu0 %vm47_vm1, %v42_v2  ;;  %vm90_vm2 = vcmp.eq.s32.totalorder %v89_v15, 0 }
  0x8c   :  { %v72_v4 = vpop.f32.mrf.mxu0 }
  0x8d   :  { %v73_v5 = vadd.f32 %v121_v3, %v72_v4 }
  0x8f   :  { %v75_v7 = vmax.f32 %v73_v5, 0.0 }
  0x91   :  { %v79_v8 = vmul.f32 %v122_v6, %v75_v7  ;;  %v84_v11 = vmul.f32 %v123_v10, %v75_v7 }
  0x93   :  { %v80_v9 = vsel %vm51_vm0, %v79_v8, 0.0  ;;  %v85_v12 = vsel %vm51_vm0, %v84_v11, 0.0 }
  0x94   :  { %81 = vadd.xlane.f32.xlu0 %v80_v9 }
  0x9c   :  { %86 = vadd.xlane.f32.xlu0 %v85_v12 }
 0x107   :  { %v82_v14 = vpop.xlane.xlu0 %81 }
 0x10f   :  { %v87_v16 = vpop.xlane.xlu0 %86 }
 0x110   :  { %v93_v17 = vsel %vm90_vm2, %v82_v14, %v87_v16 }
 0x111   :  { %95 = vst.msk [vmem:[#allocation7] sm:$0x3] %vm94_vm3, %v93_v17 }
 0x112   :  { %106 = dma.vmem_to_hbm [thread:$0]  %s102_s1, 32, %s104_s23, [#allocation4]  }
 0x113   :  { %200 = dma.done.wait [#allocation4], 32  }
 0x114   :  { %201 = vsyncadd [#allocation4], 4294967264 }
 0x115   :  { %111 = vsyncpa [#allocation3], 1 }
 0x116   :  { %112 = vsyncpa [#allocation6], 1 }
 0x117   :  { %113 = vsyncpa [#allocation4], 1 }

</bundles_post_ra>
